<compile_context>
chip_gen: v5e
topology: v5e:2x2
jax: 0.10.0
libtpu: 0.0.40
codegen_flags: <defaults>
</compile_context>

<pallas_src>
import functools

import jax
import jax.numpy as jnp
from jax import lax
from jax.experimental import pallas as pl
from jax.experimental.pallas import tpu as pltpu


def _round_up(a, b):
    return ((a + b - 1) // b) * b


@functools.lru_cache(maxsize=None)
def _vmem_capacity_bytes():
    try:
        return int(pltpu.get_tpu_info().vmem_capacity_bytes)
    except Exception:
        # Conservative fallback (treated as a 64-MiB-VMEM part below).
        return 64 * 1024 * 1024


def _pick_block(total, cap):
    """Largest multiple of 128 that divides `total` (a multiple of 128) and is <= cap."""
    best = 128
    d = 128
    while d <= min(total, cap):
        if total % d == 0:
            best = d
        d += 128
    return best


# --------------- fused (BN-affine'd) Conv1d + bias + Hardtanh kernel ----------
def _conv_bn_ht_kernel(x_ref, w_ref, b_ref, o_ref, col_ref, *,
                       K, C, tm, stride, dilation, min_val, max_val):
    # x_ref  : (rows2, stride*C)  haloed, BN-affine'd input tile (channels on
    #          lanes; rows pre-grouped by stride so taps are static slices).
    # w_ref  : (K*C, block_o)     tap-major conv weights.
    # b_ref  : (1, block_o)       bias (f32).
    # o_ref  : (tm, block_o)      output tile.
    # col_ref: (tm, K*C)          VMEM im2col scratch (compute dtype).
    for k in range(K):                        # K small static-slice VMEM copies
        r0 = (k * dilation) // stride         # static row offset
        ph = (k * dilation) % stride          # static stride phase -> lane offset
        col_ref[:, k * C:(k + 1) * C] = x_ref[r0:r0 + tm, ph * C:(ph + 1) * C]
    # Single deep (K*C) contraction on the MXU, f32 accumulate.
    y = jnp.dot(col_ref[...], w_ref[...], preferred_element_type=jnp.float32)
    y = y + b_ref[...]                                        # bias in f32
    o_ref[...] = jnp.clip(y, min_val, max_val).astype(o_ref.dtype)   # Hardtanh


# ------------------------------- module wrapper ------------------------------
@functools.partial(jax.jit, static_argnames=("padding", "stride", "dilation",
                                             "compute_dtype", "out_dtype",
                                             "min_val", "max_val"))
def conv_block_spect_forward(x, params, *, padding, stride, dilation,
                             compute_dtype=jnp.bfloat16,
                             out_dtype=jnp.float32,
                             min_val=-1.0, max_val=1.0, eps=1e-5):
    N, C, L = x.shape
    weight, bias = params["conv_w"], params["conv_b"]
    O, _, K = weight.shape
    L_out = (L + 2 * padding - dilation * (K - 1) - 1) // stride + 1
    assert L_out >= 1

    # --- BatchNorm1d (eval) folded into the layout pass (no extra HBM trip) ---
    scale = params["gamma"] / jnp.sqrt(params["running_var"] + eps)   # (C,)
    shift = params["beta"] - params["running_mean"] * scale           # (C,)
    xb = x * scale[None, :, None] + shift[None, :, None]              # (N, C, L)
    x_nlc = jnp.transpose(xb, (0, 2, 1))                              # (N, L, C)

    # --- generation-aware tiling ---------------------------------------------
    vmem_cap = _vmem_capacity_bytes()
    if vmem_cap <= 64 * 1024 * 1024:          # v7x-class (64 MiB physical VMEM)
        tm_cap, bo_cap, vmem_limit = 256, 512, 48 * 1024 * 1024
    else:                                      # v5e / v6e (128 MiB physical)
        tm_cap, bo_cap, vmem_limit = 512, 1024, 96 * 1024 * 1024

    tm = min(_round_up(L_out, 8), tm_cap)            # output rows per tile
    n_tiles = -(-L_out // tm)
    rows2 = _round_up(tm + ((K - 1) * dilation) // stride, 8)
    tin = rows2 * stride                             # haloed input rows per tile
    O_pad = _round_up(O, 128)
    block_o = _pick_block(O_pad, bo_cap)

    # --- haloed, channel-last, zero-padded window layout (fused by XLA with the
    #     BN affine above; duplication is only the halo, not K x im2col) -------
    L_need = (n_tiles - 1) * tm * stride + tin
    right_pad = max(L_need - padding - L, 0)
    x_p = jnp.pad(x_nlc, ((0, 0), (padding, right_pad), (0, 0)))
    wins = [lax.slice_in_dim(x_p, i * tm * stride, i * tm * stride + tin, axis=1)
            for i in range(n_tiles)]
    x_blk = jnp.stack(wins, axis=1)                  # (N, n_tiles, tin, C)
    x_blk = x_blk.reshape(N, n_tiles, rows2, stride * C).astype(compute_dtype)

    # --- weights (O,C,K) -> tap-major (K*C, O_pad); bias -> (1, O_pad) f32 ----
    wt = jnp.transpose(weight, (2, 1, 0)).reshape(K * C, O)
    wt = jnp.pad(wt, ((0, 0), (0, O_pad - O))).astype(compute_dtype)
    b2 = jnp.pad(bias, (0, O_pad - O)).reshape(1, O_pad).astype(jnp.float32)

    kernel = functools.partial(_conv_bn_ht_kernel, K=K, C=C, tm=tm,
                               stride=stride, dilation=dilation,
                               min_val=min_val, max_val=max_val)

    out = pl.pallas_call(
        kernel,
        out_shape=jax.ShapeDtypeStruct((N, n_tiles * tm, O_pad), out_dtype),
        grid_spec=pltpu.PrefetchScalarGridSpec(
            num_scalar_prefetch=0,
            # Row-tile axis innermost: the (K*C, block_o) weight tile keeps the
            # same block index across the inner loop, so it stays VMEM-resident
            # instead of being re-streamed from HBM every step.
            grid=(N, O_pad // block_o, n_tiles),
            in_specs=[
                pl.BlockSpec((None, None, rows2, stride * C),
                             lambda n, j, i: (n, i, 0, 0)),
                pl.BlockSpec((K * C, block_o), lambda n, j, i: (0, j)),
                pl.BlockSpec((1, block_o), lambda n, j, i: (0, j)),
            ],
            out_specs=pl.BlockSpec((None, tm, block_o),
                                   lambda n, j, i: (n, i, j)),
            scratch_shapes=[pltpu.VMEM((tm, K * C), compute_dtype)],
        ),
        compiler_params=pltpu.CompilerParams(
            dimension_semantics=("parallel", "parallel", "parallel"),
            vmem_limit_bytes=vmem_limit,
        ),
        cost_estimate=pl.CostEstimate(
            flops=2 * N * n_tiles * tm * K * C * O_pad,
            transcendentals=0,
            bytes_accessed=int(
                x_blk.size * x_blk.dtype.itemsize
                + N * wt.size * wt.dtype.itemsize          # weight streamed once per batch elem
                + N * n_tiles * tm * O_pad * jnp.dtype(out_dtype).itemsize),
        ),
    )(x_blk, wt, b2)

    # Dropout: identity in eval mode.
    # TODO(synk): training-mode batch statistics and dropout RNG masking are not
    #             implemented (eval-mode semantics: running stats + identity).
    # TODO(synk): the final NLC->NCL transpose is still one XLA layout pass over
    #             the output; an in-kernel XLU transpose could remove it.
    return jnp.transpose(out[:, :L_out, :O], (0, 2, 1))     # (N, O, L_out)


def make_params(in_channels, out_channels, kernel_size, key):
    k1, k2, k3, k4, k5, k6 = jax.random.split(key, 6)
    return {
        "gamma": 1.0 + 0.1 * jax.random.normal(k1, (in_channels,), jnp.float32),
        "beta": 0.1 * jax.random.normal(k2, (in_channels,), jnp.float32),
        "running_mean": 0.1 * jax.random.normal(k3, (in_channels,), jnp.float32),
        "running_var": 1.0 + 0.05 * jax.random.uniform(k4, (in_channels,), jnp.float32),
        "conv_w": 0.2 * jax.random.normal(
            k5, (out_channels, in_channels, kernel_size), jnp.float32),
        "conv_b": 0.1 * jax.random.normal(k6, (out_channels,), jnp.float32),
    }


# ------------------------------ reference (JAX) ------------------------------
def _reference(x, params, padding, stride, dilation, eps=1e-5):
    scale = params["gamma"] / jnp.sqrt(params["running_var"] + eps)
    shift = params["beta"] - params["running_mean"] * scale
    xb = x * scale[None, :, None] + shift[None, :, None]
    y = lax.conv_general_dilated(
        xb, params["conv_w"],
        window_strides=(stride,), padding=[(padding, padding)],
        rhs_dilation=(dilation,),
        dimension_numbers=("NCH", "OIH", "NCH"))
    y = y + params["conv_b"][None, :, None]
    return jnp.clip(y, -1.0, 1.0)


if __name__ == "__main__":
    key = jax.random.PRNGKey(0)

    def run_case(N, C_in, L, C_out, K, pad, stride, dilation, cdtype, tol, k):
        kx, kp = jax.random.split(k)
        x = jax.random.normal(kx, (N, C_in, L), jnp.float32)
        params = make_params(C_in, C_out, K, kp)
        out = conv_block_spect_forward(
            x, params, padding=pad, stride=stride, dilation=dilation,
            compute_dtype=cdtype)
        out = jax.block_until_ready(out)
        ref = _reference(x, params, pad, stride, dilation)
        assert out.shape == ref.shape, (out.shape, ref.shape)
        err = float(jnp.max(jnp.abs(out - ref)))
        assert err < tol, (err, tol)

    k1, k2, k3, k4 = jax.random.split(key, 4)
    # Small config matching the original test (f32 exact path).
    run_case(2, 4, 16, 8, 3, 1, 1, 1, jnp.float32, 1e-4, k1)
    # Same config on the bf16 MXU path (f32 accumulate, looser tolerance).
    run_case(2, 4, 16, 8, 3, 1, 1, 1, jnp.bfloat16, 8e-2, k2)
    # Longer sequence: multiple row tiles (on small-VMEM parts) + dilation.
    run_case(1, 8, 300, 16, 5, 4, 1, 2, jnp.float32, 1e-4, k3)
    # Strided conv: exercises the stride-phase lane-slicing path.
    run_case(2, 6, 64, 32, 7, 3, 2, 1, jnp.float32, 1e-4, k4)

    print("KERNEL_OK")
</pallas_src>

<mosaic_0001>
module attributes {stable_mosaic.version = 11 : i64} {
  func.func @_conv_bn_ht_kernel(%arg0: i32, %arg1: i32, %arg2: i32, %arg3: memref<1x1x24x4xf32, #tpu.memory_space<vmem>>, %arg4: memref<12x128xf32, #tpu.memory_space<vmem>>, %arg5: memref<1x128xf32, #tpu.memory_space<vmem>>, %arg6: memref<1x16x128xf32, #tpu.memory_space<vmem>>, %arg7: memref<16x12xf32, #tpu.memory_space<vmem>>) attributes {dimension_semantics = [#tpu.dimension_semantics<parallel>, #tpu.dimension_semantics<parallel>, #tpu.dimension_semantics<parallel>], iteration_bounds = array<i64: 2, 1, 1>, scalar_prefetch = 0 : i64, scratch_operands = 1 : i64, tpu.core_type = #tpu.core_type<tc>, window_params = [{transform_indices = @transform_0, window_bounds = array<i64: 1, 1, 24, 4>}, {transform_indices = @transform_1, window_bounds = array<i64: 12, 128>}, {transform_indices = @transform_2, window_bounds = array<i64: 1, 128>}, {transform_indices = @transform_3, window_bounds = array<i64: 1, 16, 128>}]} {
    %c0 = arith.constant 0 : index
    %c0_0 = arith.constant 0 : index
    %c0_1 = arith.constant 0 : index
    %c0_2 = arith.constant 0 : index
    %0 = vector.load %arg3[%c0, %c0_0, %c0_1, %c0_2] : memref<1x1x24x4xf32, #tpu.memory_space<vmem>>, vector<1x1x16x4xf32>
    %1 = vector.shape_cast %0 : vector<1x1x16x4xf32> to vector<16x4xf32>
    %c0_3 = arith.constant 0 : index
    %c0_4 = arith.constant 0 : index
    %2 = vector.load %arg7[%c0_3, %c0_4] : memref<16x12xf32, #tpu.memory_space<vmem>>, vector<16x4xf32>
    tpu.vector_store %arg7[%c0_3, %c0_4], %1 {strides = array<i32>} : memref<16x12xf32, #tpu.memory_space<vmem>>, vector<16x4xf32>,
    %c0_5 = arith.constant 0 : index
    %c0_6 = arith.constant 0 : index
    %c1 = arith.constant 1 : index
    %c0_7 = arith.constant 0 : index
    %3 = vector.load %arg3[%c0_5, %c0_6, %c1, %c0_7] : memref<1x1x24x4xf32, #tpu.memory_space<vmem>>, vector<1x1x16x4xf32>
    %4 = vector.shape_cast %3 : vector<1x1x16x4xf32> to vector<16x4xf32>
    %c0_8 = arith.constant 0 : index
    %c4 = arith.constant 4 : index
    %5 = vector.load %arg7[%c0_8, %c4] : memref<16x12xf32, #tpu.memory_space<vmem>>, vector<16x4xf32>
    tpu.vector_store %arg7[%c0_8, %c4], %4 {strides = array<i32>} : memref<16x12xf32, #tpu.memory_space<vmem>>, vector<16x4xf32>,
    %c0_9 = arith.constant 0 : index
    %c0_10 = arith.constant 0 : index
    %c2 = arith.constant 2 : index
    %c0_11 = arith.constant 0 : index
    %6 = vector.load %arg3[%c0_9, %c0_10, %c2, %c0_11] : memref<1x1x24x4xf32, #tpu.memory_space<vmem>>, vector<1x1x16x4xf32>
    %7 = vector.shape_cast %6 : vector<1x1x16x4xf32> to vector<16x4xf32>
    %c0_12 = arith.constant 0 : index
    %c8 = arith.constant 8 : index
    %8 = vector.load %arg7[%c0_12, %c8] : memref<16x12xf32, #tpu.memory_space<vmem>>, vector<16x4xf32>
    tpu.vector_store %arg7[%c0_12, %c8], %7 {strides = array<i32>} : memref<16x12xf32, #tpu.memory_space<vmem>>, vector<16x4xf32>,
    %c0_13 = arith.constant 0 : index
    %c0_14 = arith.constant 0 : index
    %9 = vector.load %arg7[%c0_13, %c0_14] : memref<16x12xf32, #tpu.memory_space<vmem>>, vector<16x12xf32>
    %c0_15 = arith.constant 0 : index
    %c0_16 = arith.constant 0 : index
    %10 = vector.load %arg4[%c0_15, %c0_16] : memref<12x128xf32, #tpu.memory_space<vmem>>, vector<12x128xf32>
    %cst = arith.constant dense<0.000000e+00> : vector<16x128xf32>
    %11 = tpu.matmul %9, %10, %cst {dimension_numbers = #tpu.dot_dimension_numbers<[1], [0], [0], [1], [0, 0, 1, 1], [], []>} : vector<16x12xf32>, vector<12x128xf32>, vector<16x128xf32> -> vector<16x128xf32>
    %c0_17 = arith.constant 0 : index
    %c0_18 = arith.constant 0 : index
    %12 = vector.load %arg5[%c0_17, %c0_18] : memref<1x128xf32, #tpu.memory_space<vmem>>, vector<1x128xf32>
    %13 = vector.broadcast %12 : vector<1x128xf32> to vector<16x128xf32>
    %14 = arith.addf %11, %13 : vector<16x128xf32>
    %cst_19 = arith.constant -1.000000e+00 : f32
    %cst_20 = arith.constant 1.000000e+00 : f32
    %15 = vector.broadcast %cst_19 : f32 to vector<16x128xf32>
    %16 = arith.maximumf %15, %14 : vector<16x128xf32>
    %17 = vector.broadcast %cst_20 : f32 to vector<16x128xf32>
    %18 = arith.minimumf %17, %16 : vector<16x128xf32>
    %c0_21 = arith.constant 0 : index
    %c0_22 = arith.constant 0 : index
    %c0_23 = arith.constant 0 : index
    %19 = vector.load %arg6[%c0_21, %c0_22, %c0_23] : memref<1x16x128xf32, #tpu.memory_space<vmem>>, vector<1x16x128xf32>
    %20 = vector.shape_cast %19 : vector<1x16x128xf32> to vector<16x128xf32>
    %21 = vector.shape_cast %18 : vector<16x128xf32> to vector<1x16x128xf32>
    tpu.vector_store %arg6[%c0_21, %c0_22, %c0_23], %21 {strides = array<i32>} : memref<1x16x128xf32, #tpu.memory_space<vmem>>, vector<1x16x128xf32>,
    return
  }
  func.func @transform_0(%arg0: i32, %arg1: i32, %arg2: i32) -> (i32, i32, i32, i32) {
    %c0_i32 = arith.constant 0 : i32
    %c0_i32_0 = arith.constant 0 : i32
    %c0_i32_1 = arith.constant 0 : i32
    return %arg0, %arg2, %c0_i32, %c0_i32_0 : i32, i32, i32, i32
  }
  func.func @transform_1(%arg0: i32, %arg1: i32, %arg2: i32) -> (i32, i32) {
    %c0_i32 = arith.constant 0 : i32
    %c0_i32_0 = arith.constant 0 : i32
    return %c0_i32, %arg1 : i32, i32
  }
  func.func @transform_2(%arg0: i32, %arg1: i32, %arg2: i32) -> (i32, i32) {
    %c0_i32 = arith.constant 0 : i32
    %c0_i32_0 = arith.constant 0 : i32
    return %c0_i32, %arg1 : i32, i32
  }
  func.func @transform_3(%arg0: i32, %arg1: i32, %arg2: i32) -> (i32, i32, i32) {
    %c0_i32 = arith.constant 0 : i32
    return %arg0, %arg2, %arg1 : i32, i32, i32
  }
}

</mosaic_0001>

<bundles_post_ra>
// kernel: conv_block_spect_forward.1
= control target key start
LH: loop header
LB: loop body
LE: loop exit
PB: predicated region body
PF: predicated region fallthrough
CT: control target
= control target key end

     0   :  { %s557_s12 = smov 0   ;;  %s559_s13 = smov 0   ;;  %s603_s0 = inlined_call_operand.vmem [shape: f32[2,1,24,4], index: 0, kind: input, shape index: {}]   ;;  %s604_s1 = inlined_call_operand.vmem [shape: f32[12,128], index: 1, kind: input, shape index: {}]   ;;  %s605_s2 = inlined_call_operand.vmem [shape: f32[1,128], index: 2, kind: input, shape index: {}]   ;;  %s606_s3 = inlined_call_operand.vmem [shape: f32[2,16,128], index: 3, kind: output, shape index: {}]  }
   0x1   :  { %s561_s14 = smov 0  }
   0x2 LB: > { %s32_s15 = sadd.s32 1, %s529_s13  ;;  %p469_p0 = scmp.ge.s32.totalorder %s533_s14, 1  ;;  %s533_s14 = sphi %s561_s14, %s13_s14   ;;  %s529_s13 = sphi %s559_s13, %s608_s13   ;;  %s525_s12 = sphi %s557_s12, %s607_s12  }
   0x3   : > { %p34_p1 = scmp.ge.s32.totalorder %s32_s15, 2  ;;  %p183_p2 = scmp.lt.s32.totalorder %s533_s14, 3 }
   0x5   : > { %s610_s15 = smov (%p34_p1, %s32_s15), 0  ;;  %p184_p3 = pnand %p469_p0, %p183_p2 }
   0x6   : > { %p225_p4 = scmp.lt.s32.totalorder (!%p184_p3), %s525_s12, 1  ;;  %s535_s20 = smov (!%p184_p3), 4  }
   0x7   : > { %187 = sbr.rel (%p184_p3) target bundleno = 280 (0x118), region = 32  ;;  %s536_s21 = smov (!%p184_p3), 8  }
   0xc   : > { %s612_s12 = smov (!%p225_p4, %s525_s12), 1  ;;  %vm256_vm0 = vcmask 31744   ;;  %v288_v5 = vld [vmem:[%s604_s1 + $0x8] sm:$0xf]  ;;  %vm300_vm1 = vcmask 1043456   ;;  %v287_v7 = vld [vmem:[%s604_s1] sm:$0xff] }
   0xd   : > { %s483_s16 = smul.u32 24, %s612_s12  ;;  %473 = vmatpush.msk.msra.mxu0 %vm300_vm1, %v288_v5  ;;  %481 = vmatpush.msk.msra.mxu1 %vm300_vm1, %v288_v5  ;;  %vm269_vm2 = vcmask 64544   ;;  %vm282_vm3 = vcmask 97344   ;;  %vm293_vm4 = vcmask 97280   ;;  %v510_v14 = vld [vmem:[%s605_s2] ss:$0 sm:$0xff] }
   0xe   : > { %s480_s28 = sshll.u32 %s612_s12, 4 }
   0xf   : > { %s233_s19 = scalar_lea.vmem %s603_s0, %s483_s16  ;;  %319 = vmatpush.msra.mxu0 %v287_v7  ;;  %482 = vmatpush.msra.mxu1 %v287_v7  ;;  %s252_s4 = scalar_lea.vmem %s606_s3, %s480_s28 }
  0x10   : > { %v259_v0 = vld [vmem:[%s233_s19 + $0x1] sm:$0xff]  ;;  %v260_v2 = vld [vmem:[%s233_s19 + $0x9] sm:$0xff] }
  0x11   : > { %v272_v1 = vld [vmem:[%s233_s19 + $0x2] sm:$0xff]  ;;  %263 = vrot.lane.b32.xlu0 %v259_v0, %s535_s20  ;;  %v273_v3 = vld [vmem:[%s233_s19 + $0xa] sm:$0xff] }
  0x12   : > { %276 = vrot.lane.b32.xlu1 %v272_v1, %s536_s21  ;;  %v254_v4 = vld [vmem:[%s233_s19] sm:$0xff]  ;;  %v255_v6 = vld [vmem:[%s233_s19 + $0x8] sm:$0xff] }
  0x13   : > { %257 = vst.msk [vmem:[#allocation2] sm:$0xff] %vm256_vm0, %v254_v4 }
  0x14   : > { %258 = vst.msk [vmem:[#allocation2 + $0x8] sm:$0xff] %vm256_vm0, %v255_v6 }
  0x19   : > { %265 = vrot.lane.b32.xlu0 %v260_v2, %s535_s20 }
  0x1a   : > { %278 = vrot.lane.b32.xlu1 %v273_v3, %s536_s21 }
  0x83   : > { %v264_v8 = vpop.permute.xlu0 %263 }
  0x84   : > { %v277_v9 = vpop.permute.xlu1 %276  ;;  %270 = vst.msk [vmem:[#allocation2] sm:$0xff] %vm269_vm2, %v264_v8 }
  0x85   : > { %283 = vst.msk [vmem:[#allocation2] sm:$0xff] %vm282_vm3, %v277_v9 }
  0x8b   : > { %v266_v10 = vpop.permute.xlu0 %265 }
  0x8c   : > { %v279_v11 = vpop.permute.xlu1 %278  ;;  %271 = vst.msk [vmem:[#allocation2 + $0x8] sm:$0xff] %vm269_vm2, %v266_v10  ;;  %v285_v12 = vld [vmem:[#allocation2] sm:$0xff] }
  0x8d   : > { %284 = vst.msk [vmem:[#allocation2 + $0x8] sm:$0xff] %vm282_vm3, %v279_v11  ;;  %474 = vmatmul.msk.f32.vlgmr.msra.gmra.mxu0 %vm293_vm4, %v285_v12 }
  0x94   : > { %v286_v13 = vld [vmem:[#allocation2 + $0x8] sm:$0xff] }
  0x95   : > { %475 = vmatmul.msk.f32.vlgmr.msra.gmra.mxu1 %vm293_vm4, %v286_v13 }
 0x10a   : > { %v321_v15 = vpop.f32.mrf.mxu0 }
 0x10b   : > { %v322_v16 = vadd.f32 %v510_v14, %v321_v15 }
 0x10d   : > { %v476_v17 = vclamps-f32 %v322_v16, 1.0 }
 0x10f   : > { %331 = vst [vmem:[%s252_s4] sm:$0xff] %v476_v17 }
 0x112   : > { %v324_v18 = vpop.f32.mrf.mxu1 }
 0x113   : > { %v325_v19 = vadd.f32 %v510_v14, %v324_v18 }
 0x115   : > { %v477_v20 = vclamps-f32 %v325_v19, 1.0 }
 0x117   : > { %332 = vst [vmem:[%s252_s4 + $0x8] sm:$0xff] %v477_v20 }
 0x118 PF: > { %s13_s14 = sadd.s32 1, %s533_s14   ;;  %s607_s12 = smov %s529_s13 }
 0x119   : > { %p10_p5 = scmp.ge.s32.totalorder %s13_s14, 4   ;;  %s608_s13 = smov %s610_s15 }
 0x11b   :  { %12 = sbr.rel (!%p10_p5) target bundleno = 2 (0x2), region = 68 }

</bundles_post_ra>
